<compile_context>
chip_gen: v7x
topology: tpu7x:2x2x1
jax: 0.10.0
libtpu: 0.0.40
codegen_flags: <defaults>
</compile_context>

<pallas_src>
import jax
import jax.numpy as jnp
from jax import lax
from jax.experimental import pallas as pl
from jax.experimental.pallas import tpu as pltpu

BN_EPS = 1e-5


def _round_up(x, m):
    return ((x + m - 1) // m) * m


def critic_kernel(state_ref, action_ref, scale_ref, shift_ref,
                  w1_ref, wm_ref, bm_ref, w2_ref, b2_ref, out_ref):
    """One batch tile: BN(affine) -> fc1 -> ReLU -> fc_merged -> ReLU -> fc2."""
    s = state_ref[...]                       # (tb, S) f32
    a = action_ref[...]                      # (tb, A) f32

    # BatchNorm1d folded into a per-feature affine.  scale/shift come from the
    # full-batch statistics computed outside the tiled kernel, so batch tiling
    # cannot change BN training-mode semantics.  Elementwise math stays f32.
    xn = s * scale_ref[...] + shift_ref[...]

    # fc1 (bias=False) + ReLU.  bf16 MXU operands, f32 accumulation.
    h1 = jnp.dot(xn.astype(jnp.bfloat16), w1_ref[...],
                 preferred_element_type=jnp.float32)
    h1 = jnp.maximum(h1, 0.0)                # (tb, F1) f32

    # fc_merged on concat(h1, action): ONE fused MXU matmul (wm holds both the
    # h-part rows and the action-part rows).  Concat in f32, then cast once.
    cat = jnp.concatenate([h1, a], axis=-1).astype(jnp.bfloat16)   # (tb, F1+A)
    h2 = jnp.dot(cat, wm_ref[...], preferred_element_type=jnp.float32) + bm_ref[...]
    h2 = jnp.maximum(h2, 0.0)                # (tb, F2) f32

    # fc2 has out_features == 1: use a VPU multiply + cross-lane (XLU) reduce
    # instead of a narrow-N MXU matmul.  w2 is a (1, F2) row.
    q = jnp.sum(h2 * w2_ref[...], axis=-1, keepdims=True) + b2_ref[...]
    out_ref[...] = q.astype(out_ref.dtype)   # (tb, 1)


def critic_forward(state, action, params, *, batch_tile=512):
    """Critic.forward(state, action) -> (B, 1) Q-values via a tiled Pallas kernel."""
    gamma, beta, w1, wm, bm, w2_row, b2 = params
    B, S = state.shape
    A = action.shape[1]
    F1 = w1.shape[1]
    assert wm.shape[0] == F1 + A

    state_f32 = state.astype(jnp.float32)
    action_f32 = action.astype(jnp.float32)

    # --- Full-batch BatchNorm1d statistics (training mode, biased variance),
    # computed with plain XLA on the UN-padded batch and folded to scale/shift.
    # (Centered two-pass form kept for numerical stability, per review note.)
    mean = jnp.mean(state_f32, axis=0, keepdims=True)
    var = jnp.mean(jnp.square(state_f32 - mean), axis=0, keepdims=True)
    scale = (gamma * lax.rsqrt(var + BN_EPS)).astype(jnp.float32)   # (1, S)
    shift = (beta - mean * scale).astype(jnp.float32)               # (1, S)

    # --- Batch tiling: pad B up to a multiple of the tile, grid over tiles.
    batch_tile = _round_up(max(int(batch_tile), 8), 8)
    tb = batch_tile if B >= batch_tile else _round_up(B, 8)
    B_pad = _round_up(B, tb)
    if B_pad != B:
        pad = ((0, B_pad - B), (0, 0))
        state_f32 = jnp.pad(state_f32, pad)      # padded rows produce junk Q,
        action_f32 = jnp.pad(action_f32, pad)    # sliced off below
    grid = (B_pad // tb,)

    # bf16 operands for the MXU (full rate on v6e/v7x, portable to v5e);
    # accumulation stays f32 via preferred_element_type in the kernel.
    w1_bf = w1.astype(jnp.bfloat16)
    wm_bf = wm.astype(jnp.bfloat16)

    batch_spec = lambda feat: pl.BlockSpec((tb, feat), lambda i: (i, 0))
    # Parameters: constant block index for every grid step -> copied once and
    # kept VMEM-resident (Pallas skips the DMA when the block index is unchanged).
    resident = lambda arr: pl.BlockSpec(arr.shape, lambda i: (0, 0))

    out = pl.pallas_call(
        critic_kernel,
        out_shape=jax.ShapeDtypeStruct((B_pad, 1), jnp.float32),
        grid=grid,
        in_specs=[
            batch_spec(S),                 # state tile
            batch_spec(A),                 # action tile
            resident(scale), resident(shift),
            resident(w1_bf), resident(wm_bf),
            resident(bm), resident(w2_row), resident(b2),
        ],
        out_specs=pl.BlockSpec((tb, 1), lambda i: (i, 0)),
        compiler_params=pltpu.CompilerParams(
            dimension_semantics=("parallel",),      # megacore sharding on v7x
            vmem_limit_bytes=32 * 1024 * 1024,      # fits v7x, raises v5e default
        ),
    )(state_f32, action_f32, scale, shift, w1_bf, wm_bf, bm, w2_row, b2)

    return out[:B]


def init_critic_params(key, state_size, action_size, fc1_units, fc2_units):
    """Deterministic init mirroring Critic.reset_parameters (Lillicrap et al.)."""
    k1, k2, k3, k4, k5 = jax.random.split(key, 5)

    # BatchNorm1d affine params (default init: gamma=1, beta=0).
    gamma = jnp.ones((1, state_size), jnp.float32)
    beta = jnp.zeros((1, state_size), jnp.float32)

    # fc1: Linear(state_size, fc1_units, bias=False), U(-1/sqrt(S), 1/sqrt(S)).
    b1 = 1.0 / jnp.sqrt(float(state_size))
    w1 = jax.random.uniform(k1, (state_size, fc1_units), jnp.float32, -b1, b1)

    # fc_merged: Linear(fc1_units + action_size, fc2_units)  (single fused weight).
    merged_in = fc1_units + action_size
    bm_bound = 1.0 / jnp.sqrt(float(merged_in))
    wm = jax.random.uniform(k2, (merged_in, fc2_units), jnp.float32,
                            -bm_bound, bm_bound)
    bm = jax.random.uniform(k3, (1, fc2_units), jnp.float32, -bm_bound, bm_bound)

    # fc2: Linear(fc2_units, 1); weight U(-0.003, 0.003), bias default init.
    # Stored as a (1, F2) row so the kernel can do a VPU reduce instead of matmul.
    w2_row = jax.random.uniform(k4, (1, fc2_units), jnp.float32, -3 * 0.001, 0.003)
    b2_bound = 1.0 / jnp.sqrt(float(fc2_units))
    b2 = jax.random.uniform(k5, (1, 1), jnp.float32, -b2_bound, b2_bound)

    return (gamma, beta, w1, wm, bm, w2_row, b2)


def critic_reference_bf16(state, action, params):
    """Pure-JAX reference mirroring the kernel's numerics (folded BN, bf16 MXU ops)."""
    gamma, beta, w1, wm, bm, w2_row, b2 = params
    mean = jnp.mean(state, axis=0, keepdims=True)
    var = jnp.mean(jnp.square(state - mean), axis=0, keepdims=True)
    scale = gamma * lax.rsqrt(var + BN_EPS)
    shift = beta - mean * scale
    xn = state * scale + shift
    h1 = jax.nn.relu(jnp.dot(xn.astype(jnp.bfloat16), w1.astype(jnp.bfloat16),
                             preferred_element_type=jnp.float32))
    cat = jnp.concatenate([h1, action], axis=-1).astype(jnp.bfloat16)
    h2 = jax.nn.relu(jnp.dot(cat, wm.astype(jnp.bfloat16),
                             preferred_element_type=jnp.float32) + bm)
    return jnp.sum(h2 * w2_row, axis=-1, keepdims=True) + b2


def critic_reference_f32(state, action, params):
    """Pure f32 reference matching the PyTorch module's math exactly."""
    gamma, beta, w1, wm, bm, w2_row, b2 = params
    mean = jnp.mean(state, axis=0, keepdims=True)
    var = jnp.mean(jnp.square(state - mean), axis=0, keepdims=True)
    xn = (state - mean) / jnp.sqrt(var + BN_EPS) * gamma + beta
    h1 = jax.nn.relu(xn @ w1)
    cat = jnp.concatenate([h1, action], axis=-1)
    h2 = jax.nn.relu(cat @ wm + bm)
    return h2 @ w2_row.T + b2


if __name__ == "__main__":
    key = jax.random.PRNGKey(0)
    k_s, k_a, k_p = jax.random.split(key, 3)

    # Small shapes consistent with the module's forward signature.
    # fc1_units is a multiple of 128 so the concat(h1, action) is lane-aligned.
    batch, state_size, action_size = 8, 8, 4
    fc1_units, fc2_units = 128, 128

    state = jax.random.normal(k_s, (batch, state_size), jnp.float32)
    action = jax.random.normal(k_a, (batch, action_size), jnp.float32)
    params = init_critic_params(k_p, state_size, action_size, fc1_units, fc2_units)

    # --- Check 1: single-tile path.
    q = jax.block_until_ready(critic_forward(state, action, params))
    assert q.shape == (batch, 1)
    q_bf = critic_reference_bf16(state, action, params)
    q_f32 = critic_reference_f32(state, action, params)
    assert jnp.allclose(q, q_bf, atol=1e-4, rtol=1e-4), (q, q_bf)
    assert jnp.allclose(q, q_f32, atol=5e-2, rtol=5e-2), (q, q_f32)

    # --- Check 2: multi-tile batch grid + padding path (still small: 100 rows,
    # tile=32 -> padded to 128 rows, grid of 4 parallel tiles).
    batch2 = 100
    k_s2, k_a2 = jax.random.split(jax.random.PRNGKey(1), 2)
    state2 = jax.random.normal(k_s2, (batch2, state_size), jnp.float32)
    action2 = jax.random.normal(k_a2, (batch2, action_size), jnp.float32)
    q2 = jax.block_until_ready(critic_forward(state2, action2, params, batch_tile=32))
    assert q2.shape == (batch2, 1)
    q2_bf = critic_reference_bf16(state2, action2, params)
    assert jnp.allclose(q2, q2_bf, atol=1e-4, rtol=1e-4), (q2, q2_bf)

    print("KERNEL_OK")
</pallas_src>

<mosaic_0001>
module attributes {stable_mosaic.version = 11 : i64} {
  func.func @critic_kernel(%arg0: i32, %arg1: memref<8x8xf32, #tpu.memory_space<vmem>>, %arg2: memref<8x4xf32, #tpu.memory_space<vmem>>, %arg3: memref<1x8xf32, #tpu.memory_space<vmem>>, %arg4: memref<1x8xf32, #tpu.memory_space<vmem>>, %arg5: memref<8x128xbf16, #tpu.memory_space<vmem>>, %arg6: memref<132x128xbf16, #tpu.memory_space<vmem>>, %arg7: memref<1x128xf32, #tpu.memory_space<vmem>>, %arg8: memref<1x128xf32, #tpu.memory_space<vmem>>, %arg9: memref<1x1xf32, #tpu.memory_space<vmem>>, %arg10: memref<8x1xf32, #tpu.memory_space<vmem>>) attributes {dimension_semantics = [#tpu.dimension_semantics<parallel>], iteration_bounds = array<i64: 1>, scalar_prefetch = 0 : i64, scratch_operands = 0 : i64, tpu.core_type = #tpu.core_type<tc>, window_params = [{transform_indices = @transform_0, window_bounds = array<i64: 8, 8>}, {transform_indices = @transform_1, window_bounds = array<i64: 8, 4>}, {pipeline_mode = #tpu.pipeline_mode<synchronous>, transform_indices = @transform_2, window_bounds = array<i64: 1, 8>}, {pipeline_mode = #tpu.pipeline_mode<synchronous>, transform_indices = @transform_3, window_bounds = array<i64: 1, 8>}, {pipeline_mode = #tpu.pipeline_mode<synchronous>, transform_indices = @transform_4, window_bounds = array<i64: 8, 128>}, {pipeline_mode = #tpu.pipeline_mode<synchronous>, transform_indices = @transform_5, window_bounds = array<i64: 132, 128>}, {pipeline_mode = #tpu.pipeline_mode<synchronous>, transform_indices = @transform_6, window_bounds = array<i64: 1, 128>}, {pipeline_mode = #tpu.pipeline_mode<synchronous>, transform_indices = @transform_7, window_bounds = array<i64: 1, 128>}, {pipeline_mode = #tpu.pipeline_mode<synchronous>, transform_indices = @transform_8, window_bounds = array<i64: 1, 1>}, {transform_indices = @transform_9, window_bounds = array<i64: 8, 1>}]} {
    %c0 = arith.constant 0 : index
    %c0_0 = arith.constant 0 : index
    %0 = vector.load %arg1[%c0, %c0_0] : memref<8x8xf32, #tpu.memory_space<vmem>>, vector<8x8xf32>
    %c0_1 = arith.constant 0 : index
    %c0_2 = arith.constant 0 : index
    %1 = vector.load %arg2[%c0_1, %c0_2] : memref<8x4xf32, #tpu.memory_space<vmem>>, vector<8x4xf32>
    %c0_3 = arith.constant 0 : index
    %c0_4 = arith.constant 0 : index
    %2 = vector.load %arg3[%c0_3, %c0_4] : memref<1x8xf32, #tpu.memory_space<vmem>>, vector<1x8xf32>
    %3 = vector.broadcast %2 : vector<1x8xf32> to vector<8x8xf32>
    %4 = arith.mulf %0, %3 : vector<8x8xf32>
    %c0_5 = arith.constant 0 : index
    %c0_6 = arith.constant 0 : index
    %5 = vector.load %arg4[%c0_5, %c0_6] : memref<1x8xf32, #tpu.memory_space<vmem>>, vector<1x8xf32>
    %6 = vector.broadcast %5 : vector<1x8xf32> to vector<8x8xf32>
    %7 = arith.addf %4, %6 : vector<8x8xf32>
    %8 = arith.truncf %7 : vector<8x8xf32> to vector<8x8xbf16>
    %c0_7 = arith.constant 0 : index
    %c0_8 = arith.constant 0 : index
    %9 = vector.load %arg5[%c0_7, %c0_8] : memref<8x128xbf16, #tpu.memory_space<vmem>>, vector<8x128xbf16>
    %cst = arith.constant dense<0.000000e+00> : vector<8x128xf32>
    %10 = tpu.matmul %8, %9, %cst {dimension_numbers = #tpu.dot_dimension_numbers<[1], [0], [0], [1], [0, 0, 1, 1], [], []>} : vector<8x8xbf16>, vector<8x128xbf16>, vector<8x128xf32> -> vector<8x128xf32>
    %cst_9 = arith.constant 0.000000e+00 : f32
    %11 = vector.broadcast %cst_9 : f32 to vector<8x128xf32>
    %12 = arith.maximumf %10, %11 : vector<8x128xf32>
    %13 = tpu.concatenate %12, %1 in 1 : vector<8x128xf32>, vector<8x4xf32> -> vector<8x132xf32>
    %14 = arith.truncf %13 : vector<8x132xf32> to vector<8x132xbf16>
    %c0_10 = arith.constant 0 : index
    %c0_11 = arith.constant 0 : index
    %15 = vector.load %arg6[%c0_10, %c0_11] : memref<132x128xbf16, #tpu.memory_space<vmem>>, vector<132x128xbf16>
    %cst_12 = arith.constant dense<0.000000e+00> : vector<8x128xf32>
    %16 = tpu.matmul %14, %15, %cst_12 {dimension_numbers = #tpu.dot_dimension_numbers<[1], [0], [0], [1], [0, 0, 1, 1], [], []>} : vector<8x132xbf16>, vector<132x128xbf16>, vector<8x128xf32> -> vector<8x128xf32>
    %c0_13 = arith.constant 0 : index
    %c0_14 = arith.constant 0 : index
    %17 = vector.load %arg7[%c0_13, %c0_14] : memref<1x128xf32, #tpu.memory_space<vmem>>, vector<1x128xf32>
    %18 = vector.broadcast %17 : vector<1x128xf32> to vector<8x128xf32>
    %19 = arith.addf %16, %18 : vector<8x128xf32>
    %cst_15 = arith.constant 0.000000e+00 : f32
    %20 = vector.broadcast %cst_15 : f32 to vector<8x128xf32>
    %21 = arith.maximumf %19, %20 : vector<8x128xf32>
    %c0_16 = arith.constant 0 : index
    %c0_17 = arith.constant 0 : index
    %22 = vector.load %arg8[%c0_16, %c0_17] : memref<1x128xf32, #tpu.memory_space<vmem>>, vector<1x128xf32>
    %23 = vector.broadcast %22 : vector<1x128xf32> to vector<8x128xf32>
    %24 = arith.mulf %21, %23 : vector<8x128xf32>
    %cst_18 = arith.constant dense<0.000000e+00> : vector<8xf32>
    %25 = vector.multi_reduction <add>, %24, %cst_18 [1] : vector<8x128xf32> to vector<8xf32>
    %26 = vector.shape_cast %25 : vector<8xf32> to vector<8x1xf32>
    %c0_19 = arith.constant 0 : index
    %c0_20 = arith.constant 0 : index
    %27 = vector.load %arg9[%c0_19, %c0_20] : memref<1x1xf32, #tpu.memory_space<vmem>>, vector<1x1xf32>
    %28 = vector.broadcast %27 : vector<1x1xf32> to vector<8x1xf32>
    %29 = arith.addf %26, %28 : vector<8x1xf32>
    %c0_21 = arith.constant 0 : index
    %c0_22 = arith.constant 0 : index
    %30 = vector.load %arg10[%c0_21, %c0_22] : memref<8x1xf32, #tpu.memory_space<vmem>>, vector<8x1xf32>
    tpu.vector_store %arg10[%c0_21, %c0_22], %29 {strides = array<i32>} : memref<8x1xf32, #tpu.memory_space<vmem>>, vector<8x1xf32>,
    return
  }
  func.func @transform_0(%arg0: i32) -> (i32, i32) {
    %c0_i32 = arith.constant 0 : i32
    %c0_i32_0 = arith.constant 0 : i32
    return %arg0, %c0_i32 : i32, i32
  }
  func.func @transform_1(%arg0: i32) -> (i32, i32) {
    %c0_i32 = arith.constant 0 : i32
    %c0_i32_0 = arith.constant 0 : i32
    return %arg0, %c0_i32 : i32, i32
  }
  func.func @transform_2(%arg0: i32) -> (i32, i32) {
    %c0_i32 = arith.constant 0 : i32
    %c0_i32_0 = arith.constant 0 : i32
    %c0_i32_1 = arith.constant 0 : i32
    return %c0_i32, %c0_i32_0 : i32, i32
  }
  func.func @transform_3(%arg0: i32) -> (i32, i32) {
    %c0_i32 = arith.constant 0 : i32
    %c0_i32_0 = arith.constant 0 : i32
    %c0_i32_1 = arith.constant 0 : i32
    return %c0_i32, %c0_i32_0 : i32, i32
  }
  func.func @transform_4(%arg0: i32) -> (i32, i32) {
    %c0_i32 = arith.constant 0 : i32
    %c0_i32_0 = arith.constant 0 : i32
    %c0_i32_1 = arith.constant 0 : i32
    return %c0_i32, %c0_i32_0 : i32, i32
  }
  func.func @transform_5(%arg0: i32) -> (i32, i32) {
    %c0_i32 = arith.constant 0 : i32
    %c0_i32_0 = arith.constant 0 : i32
    %c0_i32_1 = arith.constant 0 : i32
    return %c0_i32, %c0_i32_0 : i32, i32
  }
  func.func @transform_6(%arg0: i32) -> (i32, i32) {
    %c0_i32 = arith.constant 0 : i32
    %c0_i32_0 = arith.constant 0 : i32
    %c0_i32_1 = arith.constant 0 : i32
    return %c0_i32, %c0_i32_0 : i32, i32
  }
  func.func @transform_7(%arg0: i32) -> (i32, i32) {
    %c0_i32 = arith.constant 0 : i32
    %c0_i32_0 = arith.constant 0 : i32
    %c0_i32_1 = arith.constant 0 : i32
    return %c0_i32, %c0_i32_0 : i32, i32
  }
  func.func @transform_8(%arg0: i32) -> (i32, i32) {
    %c0_i32 = arith.constant 0 : i32
    %c0_i32_0 = arith.constant 0 : i32
    %c0_i32_1 = arith.constant 0 : i32
    return %c0_i32, %c0_i32_0 : i32, i32
  }
  func.func @transform_9(%arg0: i32) -> (i32, i32) {
    %c0_i32 = arith.constant 0 : i32
    %c0_i32_0 = arith.constant 0 : i32
    return %arg0, %c0_i32 : i32, i32
  }
}

</mosaic_0001>

<bundles_post_ra>
// kernel: tpu_custom_call.1
= control target key start
LH: loop header
LB: loop body
LE: loop exit
PB: predicated region body
PF: predicated region fallthrough
CT: control target
= control target key end

     0   :  { %s427_s0 = inlined_call_operand.vmem [shape: f32[8,8], index: 0, kind: input, shape index: {}]   ;;  %s428_s1 = inlined_call_operand.vmem [shape: f32[8,4], index: 1, kind: input, shape index: {}]   ;;  %s429_s2 = inlined_call_operand.vmem [shape: f32[1,8], index: 2, kind: input, shape index: {}]   ;;  %s430_s3 = inlined_call_operand.vmem [shape: f32[1,8], index: 3, kind: input, shape index: {}]   ;;  %s431_s4 = inlined_call_operand.vmem [shape: bf16[8,128], index: 4, kind: input, shape index: {}]   ;;  %s432_s5 = inlined_call_operand.hbm [shape: bf16[132,128], index: 5, kind: input, shape index: {}]   ;;  %s433_s6 = inlined_call_operand.vmem [shape: f32[1,128], index: 6, kind: input, shape index: {}]   ;;  %s434_s7 = inlined_call_operand.vmem [shape: f32[1,128], index: 7, kind: input, shape index: {}]   ;;  %s435_s8 = inlined_call_operand.<no memory space> [shape: f32[1,1], index: 8, kind: input, shape index: {}]   ;;  %s436_s9 = inlined_call_operand.vmem [shape: f32[8,1], index: 9, kind: output, shape index: {}]  }
   0x1   :  { %v14_v0 = vstv %s435_s8 }
   0x2   :  { %15 = vst [vmem:[#allocation2] sm:$0x1] %v14_v0 }
   0x3   :  { %16 = vsyncpa [#allocation4], 0  ;;  %s332_s11 = smov [#allocation3]   ;;  %s308_s15 = scalar_lea.hbm %s432_s5, 1088 }
   0x4   :  { %s32_s12 = sshll.u32 %s332_s11, 4  ;;  %p309_p0 = scmp.ne.s32.totalorder %s432_s5, %s308_s15  ;;  %s33_s12 = int_to_ptr.vmem [resolvable:$true] %s32_s12 }
   0x5   :  { %p312_p1 = scmp.lt.u32.totalorder %s308_s15, %s432_s5 }
   0x7   :  { %p314_p2 = pnand %p312_p1, %p309_p0 }
   0x9   :  { %317 = shalt.err (!%p314_p2)
}
   0xa   :  { %s318_s8 = scalar_lea.vmem %s33_s12, 1088  ;;  %p323_p4 = scmp.lt.s32.totalorder %s33_s12, %s33_s12 }
   0xb   :  { %p319_p3 = scmp.ne.s32.totalorder %s33_s12, %s318_s8  ;;  %p324_p5 = scmp.lt.s32.totalorder %s318_s8, %s318_s8 }
   0xd   :  { %p325_p6 = por %p324_p5, %p323_p4 }
   0xf   :  { %p326_p7 = pnand %p325_p6, %p319_p3 }
  0x11   :  { %329 = shalt.err (!%p326_p7)
}
  0x12   :  { %s333_s20 = smov 64   ;;  %s334_s21 = smov 4  }
  0x13   :  { %38 = dma.hbm_to_vmem [thread:$0]  %s432_s5, 1088, %s33_s12, [#allocation4], %s333_s20, %s333_s20, %s334_s21  }
  0x14   :  { %330 = dma.done.wait [#allocation4], 1088  }
  0x15   :  { %331 = vsyncadd [#allocation4], 4294966208  ;;  %v335_v1 = vmov 0.0   ;;  %vm336_vm0 = vmmov 0   ;;  %v337_v2 = vmov 0   ;;  %vm73_vm1 = vcmask 1043456  }
  0x16   :  { %287 = vmatprep.subr.bf16.mxu0 %v335_v1  ;;  %289 = vmatprep.mubr.msk.bf16.mxu0 %vm336_vm0, %v335_v1  ;;  %v68_v3 = vld [vmem:[%s431_s4] sm:$0xf]  ;;  %v300_v11 = vld [vmem:[#allocation3 + $0x8] sm:$0xff]   ;;  %vm69_vm2 = vcmask 64512   ;;  %v301_v13 = vld [vmem:[#allocation3 + $0x10] sm:$0xff]   ;;  %vm199_vm3 = vcmask 1041408  }
  0x17   :  { %203 = vmatprep.subr.bf16.mxu1 %v337_v2  ;;  %v49_v4 = vld [vmem:[%s427_s0] sm:$0xff]  ;;  %v75_v6 = vsel %vm73_vm1, %v68_v3, 0  ;;  %v304_v16 = vld [vmem:[#allocation3 + $0x28] sm:$0xff]   ;;  %v305_v17 = vld [vmem:[#allocation3 + $0x30] sm:$0xff]   ;;  %vm195_vm4 = vcmask 31744   ;;  %vm262_vm5 = vcmask 7168  }
  0x18   :  { %v269_v5 = vld [vmem:[%s429_s2] ss:$0 sm:$0xff]  ;;  %v299_v9 = vld [vmem:[#allocation3] sm:$0xff]   ;;  %288 = vmatpush3.bf16.msra.mxu0 %v75_v6 }
  0x19   :  { %v58_v7 = vmul.f32 %v269_v5, %v49_v4  ;;  %v270_v8 = vld [vmem:[%s430_s3] ss:$0 sm:$0xff]  ;;  %204 = vmatpush1.bf16.msra.mxu1 %v299_v9  ;;  %v303_v15 = vld [vmem:[#allocation3 + $0x20] sm:$0xff]  }
  0x1a   :  { %205 = vmatprep.subr.bf16.mxu1 %v337_v2  ;;  %v302_v14 = vld [vmem:[#allocation3 + $0x18] sm:$0xff]   ;;  %v307_v19 = vld [vmem:[#allocation3 + $0x40] ss:$0 sps:$4 sm:$0x33]  }
  0x1b   :  { %v66_v10 = vadd.f32 %v270_v8, %v58_v7  ;;  %v306_v18 = vld [vmem:[#allocation3 + $0x38] sm:$0xff]   ;;  %v201_v20 = vsel %vm199_vm3, %v307_v19, 0 }
  0x1c   :  { %v50_v21 = vld [vmem:[%s428_s1] sm:$0xff] }
  0x1d   :  { %v67_v12 = vpack.c.bf16 %v66_v10, %v66_v10  ;;  %206 = vmatpush1.bf16.msra.mxu1 %v300_v11  ;;  %v119_v22 = vpack.c.bf16 %v50_v21, %v50_v21  ;;  %v272_v29 = vld [vmem:[%s433_s6] ss:$0 sm:$0xff] }
  0x1e   :  { %207 = vmatprep.subr.bf16.mxu1 %v337_v2  ;;  %v283_v34 = vld [vmem:[%s434_s7] ss:$0 sm:$0xff] }
  0x1f   :  { %290 = vmatmul.mubr.msk.bf16.vlgmr.msra.gmra.mrb[0].mxu0 %vm69_vm2, %v67_v12  ;;  %282 = vmatprep.mubr.msk.bf16.mxu1 %vm195_vm4, %v119_v22  ;;  %v284_v38 = vld [vmem:[#allocation2] ss:$0 sm:$0xff] }
  0x21   :  { %208 = vmatpush1.bf16.msra.mxu1 %v301_v13 }
  0x22   :  { %209 = vmatprep.subr.bf16.mxu1 %v337_v2 }
  0x25   :  { %210 = vmatpush1.bf16.msra.mxu1 %v302_v14 }
  0x26   :  { %211 = vmatprep.subr.bf16.mxu1 %v337_v2 }
  0x29   :  { %212 = vmatpush1.bf16.msra.mxu1 %v303_v15 }
  0x2a   :  { %213 = vmatprep.subr.bf16.mxu1 %v337_v2 }
  0x2d   :  { %214 = vmatpush1.bf16.msra.mxu1 %v304_v16 }
  0x2e   :  { %215 = vmatprep.subr.bf16.mxu1 %v337_v2 }
  0x31   :  { %216 = vmatpush1.bf16.msra.mxu1 %v305_v17 }
  0x32   :  { %217 = vmatprep.subr.bf16.mxu1 %v337_v2 }
  0x35   :  { %218 = vmatpush1.bf16.msra.mxu1 %v306_v18 }
  0x36   :  { %219 = vmatprep.subr.bf16.mxu1 %v337_v2 }
  0x39   :  { %220 = vmatpush1.bf16.msra.mxu1 %v201_v20 }
  0xf2   :  { %v111_v23 = vpop.f32.mrb[0].mxu0 }
  0xf3   :  { %v117_v24 = vmax.f32 %v111_v23, 0.0  ;;  %v291_v25 = vpop.f32.mrb[1].mxu0 }
  0xf4   :  { %v114_v26 = vpop.f32.mrb[2].mxu0 }
  0xf5   :  { %v118_v27 = vpack.c.bf16 %v117_v24, %v117_v24  ;;  %v292_v28 = vpop.f32.mrb[3].mxu0 }
  0xf7   :  { %236 = vmatmul.mubr.bf16.vlgmr.msra.gmra.mrb[0].mxu1 %v118_v27 }
 0x1ca   :  { %v237_v30 = vpop.f32.mrb[0].mxu1 }
 0x1cb   :  { %v238_v31 = vadd.f32 %v272_v29, %v237_v30  ;;  %v239_v32 = vpop.f32.mrb[1].mxu1 }
 0x1cc   :  { %v240_v33 = vpop.f32.mrb[2].mxu1 }
 0x1cd   :  { %v243_v35 = vmax.f32 %v238_v31, 0.0  ;;  %v241_v36 = vpop.f32.mrb[3].mxu1 }
 0x1cf   :  { %v251_v37 = vmul.f32 %v283_v34, %v243_v35 }
 0x1d1   :  { %252 = vadd.xlane.f32.xlu0 %v251_v37 }
 0x25e   :  { %v253_v39 = vpop.xlane.xlu0 %252 }
 0x25f   :  { %v261_v40 = vadd.f32 %v284_v38, %v253_v39 }
 0x261   :  { %263 = vst.msk [vmem:[%s436_s9] sm:$0xff] %vm262_vm5, %v261_v40 }
 0x262   :  { %268 = vsyncpa [#allocation4], 1 }

</bundles_post_ra>
